<compile_context>
chip_gen: v5e
topology: v5e:2x2
jax: 0.10.0
libtpu: 0.0.40
codegen_flags: <defaults>
</compile_context>

<pallas_src>
import jax
import jax.numpy as jnp
import numpy as np
from jax.experimental import pallas as pl
from jax.experimental.pallas import tpu as pltpu


# ----------------------------- kernel ---------------------------------------
def _basic_block_kernel(x_ref, w_ref, b_ref, out_ref):
    """One grid step == one image.

    x_ref  : (H, W*C)        f32   lane-dense activations for this image
    w_ref  : (2, 3*W*C, W*C) bf16  [conv1, conv2] banded weights (BN scale folded)
    b_ref  : (2, W*C)        f32   [bn1, bn2] folded biases (tiled over W lanes)
    out_ref: (H, W*C)        f32
    """
    h = out_ref.shape[0]
    x = x_ref[...]                                           # (H, W*C) f32

    # Top/bottom rows of the image get no contribution from the ky=0 / ky=2
    # taps (zero padding in y).  Rolls wrap only within this image's block.
    row = jax.lax.broadcasted_iota(jnp.int32, (h, 1), 0)
    not_top = row != 0
    not_bot = row != (h - 1)

    b = b_ref[...]                                           # (2, W*C) f32
    b1 = b[0:1, :]
    b2 = b[1:2, :]

    def conv3x3(inp, w):
        # out[r] = x[r-1] @ w_ky0 + x[r] @ w_ky1 + x[r+1] @ w_ky2
        up = jnp.where(not_top, pltpu.roll(inp, 1, axis=0), 0.0)      # x[r-1]
        dn = jnp.where(not_bot, pltpu.roll(inp, h - 1, axis=0), 0.0)  # x[r+1]
        lhs = jnp.concatenate([up, inp, dn], axis=1).astype(jnp.bfloat16)
        return jnp.dot(lhs, w, preferred_element_type=jnp.float32)    # (H, W*C)

    act = conv3x3(x, w_ref[0])                               # conv1 (scale folded)
    act = jnp.maximum(act + b1, 0.0)                         # bn1 bias + relu
    act = conv3x3(act, w_ref[1])                             # conv2 (scale folded)
    act = act + b2                                           # bn2 bias
    out_ref[...] = jnp.maximum(act + x, 0.0)                 # skip add + relu


# ------------------------ one-time parameter prep ----------------------------
def _fold_bn(gamma, beta, mean, var, eps):
    scale = gamma / jnp.sqrt(var + eps)
    return scale, beta - mean * scale


def _banded_conv_weights(w_oihw, img_w):
    """(Cout, Cin, 3, 3) OIHW -> (3*W*Cin, W*Cout) banded matrix.

    kx shift and x zero-padding of a stride-1 pad-1 3x3 conv are folded into
    the band structure; the three ky taps are stacked along the contraction
    axis so the conv over a full row is a single matmul."""
    w_hwio = jnp.transpose(w_oihw, (2, 3, 1, 0))             # (3, 3, Cin, Cout)
    kh, kw, cin, cout = w_hwio.shape
    per_ky = []
    for ky in range(kh):
        acc = jnp.zeros((img_w * cin, img_w * cout), w_hwio.dtype)
        for kx in range(kw):
            # band[xin, xout] = 1 where xin = xout + kx - 1 (and in range)
            band = jnp.eye(img_w, img_w, k=1 - kx, dtype=w_hwio.dtype)
            acc = acc + jnp.kron(band, w_hwio[ky, kx])
        per_ky.append(acc)
    return jnp.concatenate(per_ky, axis=0)                   # (3*W*Cin, W*Cout)


def prepare_basic_block_params(w1_oihw, bn1, w2_oihw, bn2, img_w, eps=1e-5):
    """One-time (inference weights are static): fold BN scale into the conv
    weights, band them, pack weights and biases into single kernel inputs."""
    s1, b1 = _fold_bn(*bn1, eps)
    s2, b2 = _fold_bn(*bn2, eps)
    wb1 = _banded_conv_weights(w1_oihw * s1[:, None, None, None], img_w)
    wb2 = _banded_conv_weights(w2_oihw * s2[:, None, None, None], img_w)
    w_packed = jnp.stack([wb1, wb2], axis=0).astype(jnp.bfloat16)  # (2,3*W*C,W*C)
    b_packed = jnp.stack([jnp.tile(b1, img_w),
                          jnp.tile(b2, img_w)], axis=0)            # (2, W*C)
    return w_packed, b_packed


# ------------------------------ forward --------------------------------------
@jax.jit
def basic_block_forward_nhwc(x_nhwc, w_packed, b_packed):
    """Real entry point: NHWC activations, pre-prepared packed params."""
    n, h, w, c = x_nhwc.shape
    wc = w * c
    x2d = x_nhwc.reshape(n * h, wc)                          # contiguous reshape

    out2d = pl.pallas_call(
        _basic_block_kernel,
        out_shape=jax.ShapeDtypeStruct((n * h, wc), jnp.float32),
        grid=(n,),                                           # one image per step
        in_specs=[
            pl.BlockSpec((h, wc), lambda i: (i, 0)),
            pl.BlockSpec(w_packed.shape, lambda i: (0, 0, 0)),   # weights resident
            pl.BlockSpec(b_packed.shape, lambda i: (0, 0)),      # biases resident
        ],
        out_specs=pl.BlockSpec((h, wc), lambda i: (i, 0)),
        compiler_params=pltpu.CompilerParams(
            dimension_semantics=("parallel",),               # megacore split on v7x
            vmem_limit_bytes=32 * 1024 * 1024,
        ),
    )(x2d, w_packed, b_packed)

    return out2d.reshape(n, h, w, c)


def basic_block_forward_nchw(x_nchw, w1_oihw, bn1, w2_oihw, bn2, eps=1e-5):
    """NCHW compat wrapper matching the PyTorch module interface.
    Transposes + param prep live only at this boundary; do not use per-step
    in a real model — keep activations NHWC and prep params once."""
    w_packed, b_packed = prepare_basic_block_params(
        w1_oihw, bn1, w2_oihw, bn2, x_nchw.shape[3], eps)
    x_nhwc = jnp.transpose(x_nchw, (0, 2, 3, 1))
    out = basic_block_forward_nhwc(x_nhwc, w_packed, b_packed)
    return jnp.transpose(out, (0, 3, 1, 2))


# ----------------------- pure-JAX reference ----------------------------------
def _ref_forward(x_nchw, w1, bn1, w2, bn2, eps=1e-5):
    def conv(x, w):
        return jax.lax.conv_general_dilated(
            x, w, window_strides=(1, 1), padding="SAME",
            dimension_numbers=("NCHW", "OIHW", "NCHW"))

    def bn(x, params):
        g, b, m, v = params
        return ((x - m[None, :, None, None]) / jnp.sqrt(v + eps)[None, :, None, None]
                * g[None, :, None, None] + b[None, :, None, None])

    out = jnp.maximum(bn(conv(x_nchw, w1), bn1), 0.0)
    out = bn(conv(out, w2), bn2)
    return jnp.maximum(out + x_nchw, 0.0)


if __name__ == "__main__":
    # BasicBlock(inplanes=planes=8, stride=1).  W * C = 16 * 8 = 128 -> one
    # full lane-dense vreg row per image row.
    N, C, H, W = 2, 8, 16, 16

    key = jax.random.PRNGKey(0)
    kx, kw1, kw2, kg1, kb1, km1, kv1, kg2, kb2, km2, kv2 = jax.random.split(key, 11)

    x_nchw = jax.random.normal(kx, (N, C, H, W), jnp.float32)

    # conv3x3 weights: (out_planes, in_planes, 3, 3), bias=False
    w1 = 0.1 * jax.random.normal(kw1, (C, C, 3, 3), jnp.float32)
    w2 = 0.1 * jax.random.normal(kw2, (C, C, 3, 3), jnp.float32)

    # BatchNorm2d (eval semantics): gamma, beta, running_mean, running_var
    bn1 = (1.0 + 0.1 * jax.random.normal(kg1, (C,), jnp.float32),
           0.1 * jax.random.normal(kb1, (C,), jnp.float32),
           0.1 * jax.random.normal(km1, (C,), jnp.float32),
           1.0 + 0.1 * jax.nn.softplus(jax.random.normal(kv1, (C,), jnp.float32)))
    bn2 = (1.0 + 0.1 * jax.random.normal(kg2, (C,), jnp.float32),
           0.1 * jax.random.normal(kb2, (C,), jnp.float32),
           0.1 * jax.random.normal(km2, (C,), jnp.float32),
           1.0 + 0.1 * jax.nn.softplus(jax.random.normal(kv2, (C,), jnp.float32)))

    # One-time parameter prep (hoisted off the per-call critical path).
    w_packed, b_packed = prepare_basic_block_params(w1, bn1, w2, bn2, W)
    w_packed = jax.block_until_ready(w_packed)
    b_packed = jax.block_until_ready(b_packed)

    # NHWC is the real interface; the transpose here is test-boundary only.
    x_nhwc = jnp.transpose(x_nchw, (0, 2, 3, 1))
    out_nhwc = jax.block_until_ready(
        basic_block_forward_nhwc(x_nhwc, w_packed, b_packed))

    ref = jax.block_until_ready(_ref_forward(x_nchw, w1, bn1, w2, bn2))
    ref_nhwc = jnp.transpose(ref, (0, 2, 3, 1))

    # bf16 MXU operands (f32 accumulation) + BN scale folded pre-cast ->
    # looser tolerance than pure f32.
    np.testing.assert_allclose(np.asarray(out_nhwc), np.asarray(ref_nhwc),
                               atol=5e-2, rtol=5e-2)

    print("KERNEL_OK")
</pallas_src>

<mosaic_0001>
module attributes {stable_mosaic.version = 11 : i64} {
  func.func @_basic_block_kernel(%arg0: i32, %arg1: memref<16x128xf32, #tpu.memory_space<vmem>>, %arg2: memref<2x384x128xbf16, #tpu.memory_space<vmem>>, %arg3: memref<2x128xf32, #tpu.memory_space<vmem>>, %arg4: memref<16x128xf32, #tpu.memory_space<vmem>>) attributes {dimension_semantics = [#tpu.dimension_semantics<parallel>], iteration_bounds = array<i64: 2>, scalar_prefetch = 0 : i64, scratch_operands = 0 : i64, tpu.core_type = #tpu.core_type<tc>, window_params = [{transform_indices = @transform_0, window_bounds = array<i64: 16, 128>}, {pipeline_mode = #tpu.pipeline_mode<synchronous>, transform_indices = @transform_1, window_bounds = array<i64: 2, 384, 128>}, {pipeline_mode = #tpu.pipeline_mode<synchronous>, transform_indices = @transform_2, window_bounds = array<i64: 2, 128>}, {transform_indices = @transform_3, window_bounds = array<i64: 16, 128>}]} {
    %c0 = arith.constant 0 : index
    %c0_0 = arith.constant 0 : index
    %0 = vector.load %arg1[%c0, %c0_0] : memref<16x128xf32, #tpu.memory_space<vmem>>, vector<16x128xf32>
    %1 = tpu.iota {dimensions = array<i32: 0>} : vector<16x1xi32>
    %c0_i32 = arith.constant 0 : i32
    %2 = vector.broadcast %c0_i32 : i32 to vector<16x1xi32>
    %3 = arith.cmpi ne, %1, %2 : vector<16x1xi32>
    %c15_i32 = arith.constant 15 : i32
    %4 = vector.broadcast %c15_i32 : i32 to vector<16x1xi32>
    %5 = arith.cmpi ne, %1, %4 : vector<16x1xi32>
    %c0_1 = arith.constant 0 : index
    %c0_2 = arith.constant 0 : index
    %6 = vector.load %arg3[%c0_1, %c0_2] : memref<2x128xf32, #tpu.memory_space<vmem>>, vector<2x128xf32>
    %7 = vector.extract_strided_slice %6 {offsets = [0, 0], sizes = [1, 128], strides = [1, 1]} : vector<2x128xf32> to vector<1x128xf32>
    %8 = vector.extract_strided_slice %6 {offsets = [1, 0], sizes = [1, 128], strides = [1, 1]} : vector<2x128xf32> to vector<1x128xf32>
    %c0_3 = arith.constant 0 : index
    %c0_4 = arith.constant 0 : index
    %c0_5 = arith.constant 0 : index
    %9 = vector.load %arg2[%c0_3, %c0_4, %c0_5] : memref<2x384x128xbf16, #tpu.memory_space<vmem>>, vector<1x384x128xbf16>
    %10 = vector.shape_cast %9 : vector<1x384x128xbf16> to vector<384x128xbf16>
    %c1_i32 = arith.constant 1 : i32
    %11 = tpu.dynamic_rotate %0 by %c1_i32 dim 0 : vector<16x128xf32>, i32 -> vector<16x128xf32>
    %cst = arith.constant 0.000000e+00 : f32
    %12 = vector.shape_cast %3 : vector<16x1xi1> to vector<16x1xi1>
    %13 = vector.broadcast %12 : vector<16x1xi1> to vector<16x128xi1>
    %14 = vector.broadcast %cst : f32 to vector<16x128xf32>
    %15 = arith.select %13, %11, %14 : vector<16x128xi1>, vector<16x128xf32>
    %c15_i32_6 = arith.constant 15 : i32
    %16 = tpu.dynamic_rotate %0 by %c15_i32_6 dim 0 : vector<16x128xf32>, i32 -> vector<16x128xf32>
    %cst_7 = arith.constant 0.000000e+00 : f32
    %17 = vector.shape_cast %5 : vector<16x1xi1> to vector<16x1xi1>
    %18 = vector.broadcast %17 : vector<16x1xi1> to vector<16x128xi1>
    %19 = vector.broadcast %cst_7 : f32 to vector<16x128xf32>
    %20 = arith.select %18, %16, %19 : vector<16x128xi1>, vector<16x128xf32>
    %21 = tpu.concatenate %15, %0, %20 in 1 : vector<16x128xf32>, vector<16x128xf32>, vector<16x128xf32> -> vector<16x384xf32>
    %22 = arith.truncf %21 : vector<16x384xf32> to vector<16x384xbf16>
    %cst_8 = arith.constant dense<0.000000e+00> : vector<16x128xf32>
    %23 = tpu.matmul %22, %10, %cst_8 {dimension_numbers = #tpu.dot_dimension_numbers<[1], [0], [0], [1], [0, 0, 1, 1], [], []>} : vector<16x384xbf16>, vector<384x128xbf16>, vector<16x128xf32> -> vector<16x128xf32>
    %24 = vector.broadcast %7 : vector<1x128xf32> to vector<16x128xf32>
    %25 = arith.addf %23, %24 : vector<16x128xf32>
    %cst_9 = arith.constant 0.000000e+00 : f32
    %26 = vector.broadcast %cst_9 : f32 to vector<16x128xf32>
    %27 = arith.maximumf %25, %26 : vector<16x128xf32>
    %c1 = arith.constant 1 : index
    %c0_10 = arith.constant 0 : index
    %c0_11 = arith.constant 0 : index
    %28 = vector.load %arg2[%c1, %c0_10, %c0_11] : memref<2x384x128xbf16, #tpu.memory_space<vmem>>, vector<1x384x128xbf16>
    %29 = vector.shape_cast %28 : vector<1x384x128xbf16> to vector<384x128xbf16>
    %c1_i32_12 = arith.constant 1 : i32
    %30 = tpu.dynamic_rotate %27 by %c1_i32_12 dim 0 : vector<16x128xf32>, i32 -> vector<16x128xf32>
    %cst_13 = arith.constant 0.000000e+00 : f32
    %31 = vector.shape_cast %3 : vector<16x1xi1> to vector<16x1xi1>
    %32 = vector.broadcast %31 : vector<16x1xi1> to vector<16x128xi1>
    %33 = vector.broadcast %cst_13 : f32 to vector<16x128xf32>
    %34 = arith.select %32, %30, %33 : vector<16x128xi1>, vector<16x128xf32>
    %c15_i32_14 = arith.constant 15 : i32
    %35 = tpu.dynamic_rotate %27 by %c15_i32_14 dim 0 : vector<16x128xf32>, i32 -> vector<16x128xf32>
    %cst_15 = arith.constant 0.000000e+00 : f32
    %36 = vector.shape_cast %5 : vector<16x1xi1> to vector<16x1xi1>
    %37 = vector.broadcast %36 : vector<16x1xi1> to vector<16x128xi1>
    %38 = vector.broadcast %cst_15 : f32 to vector<16x128xf32>
    %39 = arith.select %37, %35, %38 : vector<16x128xi1>, vector<16x128xf32>
    %40 = tpu.concatenate %34, %27, %39 in 1 : vector<16x128xf32>, vector<16x128xf32>, vector<16x128xf32> -> vector<16x384xf32>
    %41 = arith.truncf %40 : vector<16x384xf32> to vector<16x384xbf16>
    %cst_16 = arith.constant dense<0.000000e+00> : vector<16x128xf32>
    %42 = tpu.matmul %41, %29, %cst_16 {dimension_numbers = #tpu.dot_dimension_numbers<[1], [0], [0], [1], [0, 0, 1, 1], [], []>} : vector<16x384xbf16>, vector<384x128xbf16>, vector<16x128xf32> -> vector<16x128xf32>
    %43 = vector.broadcast %8 : vector<1x128xf32> to vector<16x128xf32>
    %44 = arith.addf %42, %43 : vector<16x128xf32>
    %45 = arith.addf %44, %0 : vector<16x128xf32>
    %cst_17 = arith.constant 0.000000e+00 : f32
    %46 = vector.broadcast %cst_17 : f32 to vector<16x128xf32>
    %47 = arith.maximumf %45, %46 : vector<16x128xf32>
    %c0_18 = arith.constant 0 : index
    %c0_19 = arith.constant 0 : index
    %48 = vector.load %arg4[%c0_18, %c0_19] : memref<16x128xf32, #tpu.memory_space<vmem>>, vector<16x128xf32>
    tpu.vector_store %arg4[%c0_18, %c0_19], %47 {strides = array<i32>} : memref<16x128xf32, #tpu.memory_space<vmem>>, vector<16x128xf32>,
    return
  }
  func.func @transform_0(%arg0: i32) -> (i32, i32) {
    %c0_i32 = arith.constant 0 : i32
    %c0_i32_0 = arith.constant 0 : i32
    return %arg0, %c0_i32 : i32, i32
  }
  func.func @transform_1(%arg0: i32) -> (i32, i32, i32) {
    %c0_i32 = arith.constant 0 : i32
    %c0_i32_0 = arith.constant 0 : i32
    %c0_i32_1 = arith.constant 0 : i32
    %c0_i32_2 = arith.constant 0 : i32
    return %c0_i32, %c0_i32_0, %c0_i32_1 : i32, i32, i32
  }
  func.func @transform_2(%arg0: i32) -> (i32, i32) {
    %c0_i32 = arith.constant 0 : i32
    %c0_i32_0 = arith.constant 0 : i32
    %c0_i32_1 = arith.constant 0 : i32
    return %c0_i32, %c0_i32_0 : i32, i32
  }
  func.func @transform_3(%arg0: i32) -> (i32, i32) {
    %c0_i32 = arith.constant 0 : i32
    %c0_i32_0 = arith.constant 0 : i32
    return %arg0, %c0_i32 : i32, i32
  }
}

</mosaic_0001>

<bundles_post_ra>
// kernel: basic_block_forward_nhwc.1
= control target key start
LH: loop header
LB: loop body
LE: loop exit
PB: predicated region body
PF: predicated region fallthrough
CT: control target
= control target key end

     0   :  { %s1108_s12 = smov 0   ;;  %s1329_s0 = inlined_call_operand.vmem [shape: f32[32,128], index: 0, kind: input, shape index: {}]   ;;  %s1330_s1 = inlined_call_operand.vmem [shape: bf16[2,384,128], index: 1, kind: input, shape index: {}]   ;;  %s1331_s2 = inlined_call_operand.vmem [shape: f32[2,128], index: 2, kind: input, shape index: {}]   ;;  %s1332_s3 = inlined_call_operand.vmem [shape: f32[32,128], index: 3, kind: output, shape index: {}]  }
   0x1 LB: > { %s759_s13 = sadd.s32 4294967295, %s1085_s12   ;;  %p763_p0 = scmp.ge.s32.totalorder %s1085_s12, 1  ;;  %s1085_s12 = sphi %s1108_s12, %s13_s12  }
   0x2   : > { %p138_p1 = scmp.lt.s32.totalorder %s1085_s12, 3 }
   0x4   : > { %p139_p2 = pnand %p763_p0, %p138_p1 }
   0x5   : > { %s764_s24 = sshll.u32 (!%p139_p2), %s759_s13, 1 }
   0x6   : > { %142 = sbr.rel (%p139_p2) target bundleno = 345 (0x159), region = 32  ;;  %p163_p3 = scmp.lt.s32.totalorder (!%p139_p2), %s764_s24, 3 }
   0xb   : > { %v1029_v0 = vld [vmem:[%s1330_s1 + $0x38] sm:$0xff]  ;;  %v1028_v3 = vld [vmem:[%s1330_s1 + $0x30] sm:$0xff]  ;;  %v1027_v6 = vld [vmem:[%s1330_s1 + $0x28] sm:$0xff]  ;;  %s1338_s24 = smov (!%p163_p3, %s764_s24), 3  ;;  %v176_v17 = vlaneseq  ;;  %vm1087_vm4 = vmmov 1  }
   0xc   : > { %v1037_v1 = vld [vmem:[%s1330_s1 + $0x78] sm:$0xff]  ;;  %402 = vmatpush.bf16.msra.mxu0 %v1029_v0  ;;  %v1036_v4 = vld [vmem:[%s1330_s1 + $0x70] sm:$0xff]  ;;  %v1035_v7 = vld [vmem:[%s1330_s1 + $0x68] sm:$0xff]  ;;  %s765_s17 = sshll.u32 %s1338_s24, 3 }
   0xd   : > { %v1045_v2 = vld [vmem:[%s1330_s1 + $0xb8] sm:$0xff]  ;;  %416 = vmatpush.bf16.msra.mxu1 %v1037_v1  ;;  %v1044_v5 = vld [vmem:[%s1330_s1 + $0xb0] sm:$0xff]  ;;  %v1043_v8 = vld [vmem:[%s1330_s1 + $0xa8] sm:$0xff]  ;;  %s166_s27 = scalar_lea.vmem %s1329_s0, %s765_s17  ;;  %v1188_v23 = vshrl.u32 %v176_v17, 7  ;;  %s172_s21 = scalar_lea.vmem %s1332_s3, %s765_s17 }
   0xe   : > { %430 = vmatpush.bf16.msra.mxu2 %v1045_v2  ;;  %v1053_v9 = vld [vmem:[%s1330_s1 + $0xf8] sm:$0xff]  ;;  %v1026_v10 = vld [vmem:[%s1330_s1 + $0x20] sm:$0xff]  ;;  %v1052_v13 = vld [vmem:[%s1330_s1 + $0xf0] sm:$0xff] }
   0xf   : > { %v1034_v11 = vld [vmem:[%s1330_s1 + $0x60] sm:$0xff]  ;;  %655 = vmatpush.bf16.msra.mxu3 %v1053_v9  ;;  %v1025_v14 = vld [vmem:[%s1330_s1 + $0x18] sm:$0xff]  ;;  %v1024_v18 = vld [vmem:[%s1330_s1 + $0x10] sm:$0xff]  ;;  %vm234_vm0 = vcmp.lt.s32.totalorder %v1188_v23, 1  ;;  %v178_v31 = vadd.s32 8, %v1188_v23  ;;  %vm245_vm1 = vcmp.lt.s32.totalorder %v1188_v23, 7 }
  0x10   : > { %403 = vmatpush.bf16.msra.mxu0 %v1028_v3  ;;  %v1042_v12 = vld [vmem:[%s1330_s1 + $0xa0] sm:$0xff]  ;;  %v1033_v15 = vld [vmem:[%s1330_s1 + $0x58] sm:$0xff]  ;;  %v1032_v19 = vld [vmem:[%s1330_s1 + $0x50] sm:$0xff]  ;;  %vm179_vm2 = vcmp.ne.s32.totalorder %v1188_v23, 0 }
  0x11   : > { %417 = vmatpush.bf16.msra.mxu1 %v1036_v4  ;;  %v1041_v16 = vld [vmem:[%s1330_s1 + $0x98] sm:$0xff]  ;;  %v1040_v20 = vld [vmem:[%s1330_s1 + $0x90] sm:$0xff]  ;;  %v1184_v21 = vld [vmem:[%s166_s27] sm:$0xff]  ;;  %vm182_vm3 = vcmp.ne.s32.totalorder %v178_v31, 15 }
  0x12   : > { %431 = vmatpush.bf16.msra.mxu2 %v1044_v5  ;;  %v1186_v22 = vld [vmem:[%s166_s27 + $0x8] sm:$0xff]  ;;  %v232_v26 = vrot.slane %v1184_v21, 7  ;;  %v243_v29 = vrot.slane %v1184_v21, 1  ;;  %v1022_v32 = vld [vmem:[%s1330_s1] sm:$0xff]  ;;  %v1061_v39 = vld [vmem:[%s1330_s1 + $0x138] sm:$0xff] }
  0x13   : > { %656 = vmatpush.bf16.msra.mxu3 %v1052_v13  ;;  %v1023_v24 = vld [vmem:[%s1330_s1 + $0x8] sm:$0xff]  ;;  %v233_v27 = vrot.slane %v1186_v22, 7  ;;  %v244_v30 = vrot.slane %v1186_v22, 1  ;;  %v1030_v33 = vld [vmem:[%s1330_s1 + $0x40] sm:$0xff]  ;;  %v1069_v40 = vld [vmem:[%s1330_s1 + $0x178] sm:$0xff]  ;;  %v255_v42 = vpack.c.bf16 %v1186_v22, %v1184_v21 }
  0x14   : > { %404 = vmatpush.bf16.msra.mxu0 %v1027_v6  ;;  %v1031_v25 = vld [vmem:[%s1330_s1 + $0x48] sm:$0xff]  ;;  %v1038_v36 = vld [vmem:[%s1330_s1 + $0x80] sm:$0xff]  ;;  %vm1232_vm5 = vmpackc.low %vm1087_vm4, %vm179_vm2 }
  0x15   : > { %418 = vmatpush.bf16.msra.mxu1 %v1035_v7  ;;  %v1039_v28 = vld [vmem:[%s1330_s1 + $0x88] sm:$0xff]  ;;  %v235_v34 = vsel %vm234_vm0, %v232_v26, %v233_v27  ;;  %v236_v35 = vsel %vm234_vm0, %v233_v27, %v232_v26  ;;  %v246_v37 = vsel %vm245_vm1, %v243_v29, %v244_v30  ;;  %v247_v38 = vsel %vm245_vm1, %v244_v30, %v243_v29  ;;  %vm1236_vm6 = vmpackc.low %vm182_vm3, %vm1087_vm4  ;;  %v1060_v46 = vld [vmem:[%s1330_s1 + $0x130] sm:$0xff] }
  0x16   : > { %432 = vmatpush.bf16.msra.mxu2 %v1043_v8  ;;  %v865_v41 = vpack.c.bf16 %v235_v34, %v236_v35  ;;  %v868_v44 = vpack.c.bf16 %v247_v38, %v246_v37  ;;  %v1068_v47 = vld [vmem:[%s1330_s1 + $0x170] sm:$0xff]  ;;  %v1059_v48 = vld [vmem:[%s1330_s1 + $0x128] sm:$0xff]  ;;  %v1058_v51 = vld [vmem:[%s1330_s1 + $0x120] sm:$0xff] }
  0x17   : > { %v1051_v49 = vld [vmem:[%s1330_s1 + $0xe8] sm:$0xff]  ;;  %v1050_v52 = vld [vmem:[%s1330_s1 + $0xe0] sm:$0xff]  ;;  %v1057_v54 = vld [vmem:[%s1330_s1 + $0x118] sm:$0xff] }
  0x18   : > { %405 = vmatpush.bf16.msra.mxu0 %v1026_v10  ;;  %v1067_v50 = vld [vmem:[%s1330_s1 + $0x168] sm:$0xff]  ;;  %657 = vmatpush.bf16.msra.mxu3 %v1051_v49  ;;  %v1066_v53 = vld [vmem:[%s1330_s1 + $0x160] sm:$0xff]  ;;  %v1049_v55 = vld [vmem:[%s1330_s1 + $0xd8] sm:$0xff] }
  0x19   : > { %419 = vmatpush.bf16.msra.mxu1 %v1034_v11  ;;  %v1065_v56 = vld [vmem:[%s1330_s1 + $0x158] sm:$0xff]  ;;  %v1056_v57 = vld [vmem:[%s1330_s1 + $0x110] sm:$0xff]  ;;  %v1055_v60 = vld [vmem:[%s1330_s1 + $0x108] sm:$0xff] }
  0x1a   : > { %433 = vmatpush.bf16.msra.mxu2 %v1042_v12  ;;  %v1048_v58 = vld [vmem:[%s1330_s1 + $0xd0] sm:$0xff]  ;;  %v1047_v61 = vld [vmem:[%s1330_s1 + $0xc8] sm:$0xff]  ;;  %v1054_v63 = vld [vmem:[%s1330_s1 + $0x100] sm:$0xff] }
  0x1b   : > { %v1064_v59 = vld [vmem:[%s1330_s1 + $0x150] sm:$0xff]  ;;  %v1063_v62 = vld [vmem:[%s1330_s1 + $0x148] sm:$0xff]  ;;  %v1046_v0 = vld [vmem:[%s1330_s1 + $0xc0] sm:$0xff] }
  0x1c   : > { %406 = vmatpush.bf16.msra.mxu0 %v1025_v14  ;;  %658 = vmatpush.bf16.msra.mxu3 %v1050_v52  ;;  %v1062_v1 = vld [vmem:[%s1330_s1 + $0x140] sm:$0xff] }
  0x1d   : > { %420 = vmatpush.bf16.msra.mxu1 %v1033_v15  ;;  %v183_v2 = vld [vmem:[%s1331_s2] sm:$0x3] }
  0x1e   : > { %434 = vmatpush.bf16.msra.mxu2 %v1041_v16  ;;  %v257_v3 = vperm.slane %v183_v2, 0 }
  0x20   : > { %407 = vmatpush.bf16.msra.mxu0 %v1024_v18  ;;  %659 = vmatpush.bf16.msra.mxu3 %v1049_v55 }
  0x21   : > { %421 = vmatpush.bf16.msra.mxu1 %v1032_v19 }
  0x22   : > { %435 = vmatpush.bf16.msra.mxu2 %v1040_v20 }
  0x24   : > { %408 = vmatpush.bf16.msra.mxu0 %v1023_v24  ;;  %660 = vmatpush.bf16.msra.mxu3 %v1048_v58 }
  0x25   : > { %422 = vmatpush.bf16.msra.mxu1 %v1031_v25 }
  0x26   : > { %436 = vmatpush.bf16.msra.mxu2 %v1039_v28 }
  0x28   : > { %409 = vmatpush.bf16.msra.mxu0 %v1022_v32  ;;  %661 = vmatpush.bf16.msra.mxu3 %v1047_v61  ;;  %v510_v32 = vperm.slane %v183_v2, 1 }
  0x29   : > { %423 = vmatpush.bf16.msra.mxu1 %v1030_v33 }
  0x2a   : > { %437 = vmatpush.bf16.msra.mxu2 %v1038_v36 }
  0x2b   : > { %866 = vmatmul.msk.bf16.vlgmr.msra.gmra.mxu0 %vm1232_vm5, %v865_v41 }
  0x2c   : > { %669 = vmatpush.bf16.msrb.mxu0 %v1061_v39  ;;  %424 = vmatmul.bf16.vlgmr.msra.gmra.mxu1 %v255_v42 }
  0x2d   : > { %683 = vmatpush.bf16.msrb.mxu1 %v1069_v40  ;;  %869 = vmatmul.msk.bf16.vlgmr.msra.gmra.mxu2 %vm1236_vm6, %v868_v44 }
  0x2e   : > { %662 = vmatpush.bf16.msra.mxu3 %v1046_v0 }
  0x30   : > { %670 = vmatpush.bf16.msrb.mxu0 %v1060_v46 }
  0x31   : > { %684 = vmatpush.bf16.msrb.mxu1 %v1068_v47 }
  0x34   : > { %671 = vmatpush.bf16.msrb.mxu0 %v1059_v48 }
  0x35   : > { %685 = vmatpush.bf16.msrb.mxu1 %v1067_v50 }
  0x38   : > { %672 = vmatpush.bf16.msrb.mxu0 %v1058_v51 }
  0x39   : > { %686 = vmatpush.bf16.msrb.mxu1 %v1066_v53 }
  0x3c   : > { %673 = vmatpush.bf16.msrb.mxu0 %v1057_v54 }
  0x3d   : > { %687 = vmatpush.bf16.msrb.mxu1 %v1065_v56 }
  0x40   : > { %674 = vmatpush.bf16.msrb.mxu0 %v1056_v57 }
  0x41   : > { %688 = vmatpush.bf16.msrb.mxu1 %v1064_v59 }
  0x44   : > { %675 = vmatpush.bf16.msrb.mxu0 %v1055_v60 }
  0x45   : > { %689 = vmatpush.bf16.msrb.mxu1 %v1063_v62 }
  0x48   : > { %676 = vmatpush.bf16.msrb.mxu0 %v1054_v63 }
  0x49   : > { %690 = vmatpush.bf16.msrb.mxu1 %v1062_v1 }
  0xa8   : > { %v411_v4 = vpop.f32.mrf.mxu0 }
  0xa9   : > { %v412_v5 = vadd.f32 %v411_v4, %v257_v3  ;;  %v425_v6 = vpop.f32.mrf.mxu1 }
  0xab   : > { %v426_v7 = vadd.f32 %v425_v6, %v412_v5 }
  0xb0   : > { %v439_v8 = vpop.f32.mrf.mxu2  ;;  %v413_v9 = vpop.f32.mrf.mxu0 }
  0xb1   : > { %v414_v10 = vadd.f32 %v413_v9, %v257_v3  ;;  %v440_v11 = vadd.f32 %v439_v8, %v426_v7  ;;  %v427_v12 = vpop.f32.mrf.mxu1 }
  0xb3   : > { %v428_v13 = vadd.f32 %v427_v12, %v414_v10  ;;  %v444_v14 = vmax.f32 %v440_v11, 0.0 }
  0xb5   : > { %v495_v18 = vrot.slane %v444_v14, 7  ;;  %v501_v19 = vrot.slane %v444_v14, 1 }
  0xb8   : > { %v441_v15 = vpop.f32.mrf.mxu2 }
  0xb9   : > { %v442_v16 = vadd.f32 %v441_v15, %v428_v13 }
  0xbb   : > { %v445_v17 = vmax.f32 %v442_v16, 0.0 }
  0xbd   : > { %v496_v20 = vrot.slane %v445_v17, 7  ;;  %v502_v24 = vrot.slane %v445_v17, 1  ;;  %v508_v25 = vpack.c.bf16 %v445_v17, %v444_v14 }
  0xbf   : > { %677 = vmatmul.bf16.vlgmr.msrb.gmra.mxu0 %v508_v25  ;;  %v497_v26 = vsel %vm234_vm0, %v495_v18, %v496_v20  ;;  %v498_v27 = vsel %vm234_vm0, %v496_v20, %v495_v18  ;;  %v503_v28 = vsel %vm245_vm1, %v501_v19, %v502_v24  ;;  %v504_v29 = vsel %vm245_vm1, %v502_v24, %v501_v19 }
  0xc0   : > { %v1015_v30 = vpack.c.bf16 %v497_v26, %v498_v27  ;;  %v1018_v31 = vpack.c.bf16 %v504_v29, %v503_v28 }
  0xc2   : > { %1016 = vmatmul.msk.bf16.vlgmr.msra.gmra.mxu3 %vm1232_vm5, %v1015_v30  ;;  %1019 = vmatmul.msk.bf16.vlgmr.msrb.gmra.mxu1 %vm1236_vm6, %v1018_v31 }
 0x13c   : > { %v678_v33 = vpop.f32.mrf.mxu0 }
 0x13f   : > { %v692_v36 = vpop.f32.mrf.mxu1 }
 0x144   : > { %v680_v42 = vpop.f32.mrf.mxu0 }
 0x145   : > { %v664_v34 = vpop.f32.mrf.mxu3 }
 0x146   : > { %v665_v35 = vadd.f32 %v664_v34, %v510_v32 }
 0x147   : > { %v694_v44 = vpop.f32.mrf.mxu1 }
 0x148   : > { %v679_v37 = vadd.f32 %v678_v33, %v665_v35 }
 0x14a   : > { %v693_v38 = vadd.f32 %v692_v36, %v679_v37 }
 0x14c   : > { %v697_v39 = vadd.f32 %v693_v38, %v1184_v21 }
 0x14d   : > { %v666_v23 = vpop.f32.mrf.mxu3 }
 0x14e   : > { %v699_v40 = vmax.f32 %v697_v39, 0.0  ;;  %v667_v41 = vadd.f32 %v666_v23, %v510_v32 }
 0x150   : > { %701 = vst [vmem:[%s172_s21] sm:$0xff] %v699_v40  ;;  %v681_v43 = vadd.f32 %v680_v42, %v667_v41 }
 0x152   : > { %v695_v45 = vadd.f32 %v694_v44, %v681_v43 }
 0x154   : > { %v698_v46 = vadd.f32 %v695_v45, %v1186_v22 }
 0x156   : > { %v700_v47 = vmax.f32 %v698_v46, 0.0 }
 0x158   : > { %702 = vst [vmem:[%s172_s21 + $0x8] sm:$0xff] %v700_v47 }
 0x159 PF: > { %s13_s12 = sadd.s32 1, %s1085_s12  }
 0x15a   : > { %p10_p4 = scmp.ge.s32.totalorder %s13_s12, 4  }
 0x15c   :  { %12 = sbr.rel (!%p10_p4) target bundleno = 1 (0x1), region = 63 }

</bundles_post_ra>
